<compile_context>
chip_gen: v6e
topology: v6e:2x2x1
jax: 0.10.0
libtpu: 0.0.40
codegen_flags: <defaults>
</compile_context>

<pallas_src>
import functools

import jax
import jax.numpy as jnp
from jax.experimental import pallas as pl
from jax.experimental.pallas import tpu as pltpu


def _round_up(x, m):
    return ((x + m - 1) // m) * m


def _layernorm_epilogue(y, params_f32, *, eps, h_real):
    """y: (tm, Hp) f32 pre-bias matmul result; params_f32: (3, Hp) f32."""
    h_pad = y.shape[-1]
    inv_h = 1.0 / float(h_real)
    b = params_f32[0:1, :]
    g = params_f32[1:2, :]
    beta = params_f32[2:3, :]

    y = y + b
    mean = jnp.sum(y, axis=-1, keepdims=True) * inv_h
    centered = y - mean
    sq = jnp.sum(centered * centered, axis=-1, keepdims=True)
    if h_pad != h_real:
        # Padded hidden columns of y are exactly zero (zero-padded W and bias),
        # so the mean is already correct and each padded column contributes
        # mean^2 to the squared sum — remove that with a scalar correction
        # instead of building a (tm, Hp) mask.
        sq = sq - float(h_pad - h_real) * (mean * mean)
    var = sq * inv_h
    inv = jax.lax.rsqrt(var + eps)
    # Padded gamma/beta are zero -> padded output columns are exactly 0.
    return centered * inv * g + beta


def _proj_ln_single_k_kernel(x_ref, w_ref, p_ref, o_ref, *, eps, h_real):
    # x_ref: (tm, K)  w_ref: (K, Hp)  p_ref: (3, Hp)  o_ref: (tm, Hp)
    y = jnp.dot(x_ref[...], w_ref[...], preferred_element_type=jnp.float32)
    out = _layernorm_epilogue(y, p_ref[...].astype(jnp.float32),
                              eps=eps, h_real=h_real)
    o_ref[...] = out.astype(o_ref.dtype)


def _proj_ln_multi_k_kernel(x_ref, w_ref, p_ref, o_ref, acc_ref, *,
                            eps, h_real):
    # x_ref: (tm, tk)  w_ref: (tk, Hp)  p_ref: (3, Hp)  o_ref/acc_ref: (tm, Hp)
    k = pl.program_id(1)

    @pl.when(k == 0)
    def _():
        acc_ref[...] = jnp.zeros_like(acc_ref)

    # Native-dtype operands straight to the MXU; accumulate in f32.
    acc_ref[...] += jnp.dot(x_ref[...], w_ref[...],
                            preferred_element_type=jnp.float32)

    @pl.when(k == pl.num_programs(1) - 1)
    def _():
        out = _layernorm_epilogue(acc_ref[...], p_ref[...].astype(jnp.float32),
                                  eps=eps, h_real=h_real)
        o_ref[...] = out.astype(o_ref.dtype)


def gnn_projection(embeddings, weight, bias, ln_gamma, ln_beta, *,
                   eps=1e-5, tile_m=512, tile_k=512):
    """embeddings: (..., K); weight: (H, K); bias/ln_gamma/ln_beta: (H,)."""
    *lead, K = embeddings.shape
    H = weight.shape[0]
    dtype = embeddings.dtype

    x2d = embeddings.reshape(-1, K)
    M = x2d.shape[0]

    # ---- tile / padding choices -------------------------------------------
    tm = min(tile_m, _round_up(M, 8))        # big row tiles; shrink for tiny M
    M_pad = _round_up(M, tm)
    H_pad = _round_up(H, 128)                # lane-dense output stores
    if K <= tile_k:
        tk, K_pad = K, K                     # single K step, full-K block
    else:
        tk = tile_k                          # K-reduction grid axis
        K_pad = _round_up(K, tk)
    single_k = (K_pad == tk)

    # ---- zero-pad operands (exact: zero rows/cols don't change the matmul) --
    if M_pad != M or K_pad != K:
        x2d = jnp.pad(x2d, ((0, M_pad - M), (0, K_pad - K)))
    w_t = weight.T                            # (K, H): kernel does x @ w_t
    if K_pad != K or H_pad != H:
        w_t = jnp.pad(w_t, ((0, K_pad - K), (0, H_pad - H)))

    # LayerNorm params stacked into one lane-dense (3, H_pad) operand.
    params = jnp.stack([bias.astype(jnp.float32),
                        ln_gamma.astype(jnp.float32),
                        ln_beta.astype(jnp.float32)], axis=0)
    if H_pad != H:
        params = jnp.pad(params, ((0, 0), (0, H_pad - H)))

    itemsize = jnp.dtype(dtype).itemsize
    vmem_est = (2 * tm * tk * itemsize        # x tiles (double-buffered)
                + 2 * tk * H_pad * itemsize   # weight tiles
                + 2 * tm * H_pad * itemsize   # output tiles
                + (0 if single_k else tm * H_pad * 4)  # f32 accumulator
                + 2 * 8 * H_pad * 4           # stacked params (sublane-padded)
                + (2 << 20))                  # headroom
    vmem_limit = int(min(64 * 1024 * 1024, max(vmem_est, 16 * 1024 * 1024)))

    cost = pl.CostEstimate(
        flops=2 * M * K * H,
        transcendentals=M,                    # one rsqrt per row
        bytes_accessed=(M * K + K * H + M * H) * itemsize + 3 * H * 4)

    x_spec_1d = pl.BlockSpec((tm, tk), lambda i: (i, 0))
    w_spec_1d = pl.BlockSpec((tk, H_pad), lambda i: (0, 0))
    p_spec_1d = pl.BlockSpec((3, H_pad), lambda i: (0, 0))
    o_spec_1d = pl.BlockSpec((tm, H_pad), lambda i: (i, 0))

    x_spec_2d = pl.BlockSpec((tm, tk), lambda i, k: (i, k))
    w_spec_2d = pl.BlockSpec((tk, H_pad), lambda i, k: (k, 0))
    p_spec_2d = pl.BlockSpec((3, H_pad), lambda i, k: (0, 0))
    o_spec_2d = pl.BlockSpec((tm, H_pad), lambda i, k: (i, 0))

    if single_k:
        grid_spec = pltpu.PrefetchScalarGridSpec(
            num_scalar_prefetch=0,
            grid=(M_pad // tm,),
            in_specs=[x_spec_1d, w_spec_1d, p_spec_1d],
            out_specs=o_spec_1d,
        )
        kernel = functools.partial(_proj_ln_single_k_kernel,
                                   eps=eps, h_real=H)
        dim_sem = ("parallel",)
    else:
        grid_spec = pltpu.PrefetchScalarGridSpec(
            num_scalar_prefetch=0,
            grid=(M_pad // tm, K_pad // tk),
            in_specs=[x_spec_2d, w_spec_2d, p_spec_2d],
            out_specs=o_spec_2d,
            scratch_shapes=[pltpu.VMEM((tm, H_pad), jnp.float32)],
        )
        kernel = functools.partial(_proj_ln_multi_k_kernel,
                                   eps=eps, h_real=H)
        dim_sem = ("parallel", "arbitrary")

    out2d = pl.pallas_call(
        kernel,
        out_shape=jax.ShapeDtypeStruct((M_pad, H_pad), dtype),
        grid_spec=grid_spec,
        compiler_params=pltpu.CompilerParams(
            dimension_semantics=dim_sem,
            vmem_limit_bytes=vmem_limit),
        cost_estimate=cost,
    )(x2d, w_t, params)

    return out2d[:M, :H].reshape(*lead, H)


def _reference(embeddings, weight, bias, ln_gamma, ln_beta, eps=1e-5):
    y = jnp.einsum("...k,hk->...h", embeddings, weight) + bias
    mean = jnp.mean(y, axis=-1, keepdims=True)
    var = jnp.mean((y - mean) ** 2, axis=-1, keepdims=True)
    return (y - mean) / jnp.sqrt(var + eps) * ln_gamma + ln_beta


if __name__ == "__main__":
    # Small shapes: batch=2, seq=8, input_vec_length=32, hidden_vec_length=64
    B, S, K, H = 2, 8, 32, 64
    key = jax.random.PRNGKey(0)
    k_x, k_w, k_b, k_g, k_be = jax.random.split(key, 5)

    embeddings = jax.random.normal(k_x, (B, S, K), dtype=jnp.float32)
    # nn.Linear(K, H) weight is (H, K).
    weight = jax.random.normal(k_w, (H, K), dtype=jnp.float32) * 0.1
    bias = jax.random.normal(k_b, (H,), dtype=jnp.float32) * 0.1
    ln_gamma = jnp.ones((H,), dtype=jnp.float32) + 0.05 * jax.random.normal(
        k_g, (H,), dtype=jnp.float32)
    ln_beta = 0.05 * jax.random.normal(k_be, (H,), dtype=jnp.float32)

    out = gnn_projection(embeddings, weight, bias, ln_gamma, ln_beta)
    out = jax.block_until_ready(out)
    ref = _reference(embeddings, weight, bias, ln_gamma, ln_beta)
    assert out.shape == (B, S, H)
    assert jnp.allclose(out, ref, atol=1e-4, rtol=1e-4), "mismatch vs reference"

    # Exercise the ragged-M padding path (M not a multiple of 8).
    emb2 = jax.random.normal(k_x, (1, 5, K), dtype=jnp.float32)
    out2 = jax.block_until_ready(
        gnn_projection(emb2, weight, bias, ln_gamma, ln_beta))
    ref2 = _reference(emb2, weight, bias, ln_gamma, ln_beta)
    assert out2.shape == (1, 5, H)
    assert jnp.allclose(out2, ref2, atol=1e-4, rtol=1e-4), "ragged-M mismatch"

    # Exercise the K-reduction (multi-k) path with a larger projection.
    K2, H2 = 1024 + 16, 200                  # ragged K and H
    kk = jax.random.split(key, 4)
    emb3 = jax.random.normal(kk[0], (3, 7, K2), dtype=jnp.float32)
    w3 = jax.random.normal(kk[1], (H2, K2), dtype=jnp.float32) * 0.02
    b3 = jax.random.normal(kk[2], (H2,), dtype=jnp.float32) * 0.1
    g3 = jnp.ones((H2,), jnp.float32)
    be3 = 0.05 * jax.random.normal(kk[3], (H2,), dtype=jnp.float32)
    out3 = jax.block_until_ready(gnn_projection(emb3, w3, b3, g3, be3))
    ref3 = _reference(emb3, w3, b3, g3, be3)
    assert out3.shape == (3, 7, H2)
    assert jnp.allclose(out3, ref3, atol=1e-3, rtol=1e-3), "multi-k mismatch"

    print("KERNEL_OK")
</pallas_src>

<mosaic_0001>
module attributes {stable_mosaic.version = 11 : i64} {
  func.func @_proj_ln_single_k_kernel(%arg0: i32, %arg1: memref<16x32xf32, #tpu.memory_space<vmem>>, %arg2: memref<32x128xf32, #tpu.memory_space<vmem>>, %arg3: memref<3x128xf32, #tpu.memory_space<vmem>>, %arg4: memref<16x128xf32, #tpu.memory_space<vmem>>) attributes {dimension_semantics = [#tpu.dimension_semantics<parallel>], iteration_bounds = array<i64: 1>, scalar_prefetch = 0 : i64, scratch_operands = 0 : i64, tpu.core_type = #tpu.core_type<tc>, window_params = [{transform_indices = @transform_0, window_bounds = array<i64: 16, 32>}, {pipeline_mode = #tpu.pipeline_mode<synchronous>, transform_indices = @transform_1, window_bounds = array<i64: 32, 128>}, {pipeline_mode = #tpu.pipeline_mode<synchronous>, transform_indices = @transform_2, window_bounds = array<i64: 3, 128>}, {transform_indices = @transform_3, window_bounds = array<i64: 16, 128>}]} {
    %c0 = arith.constant 0 : index
    %c0_0 = arith.constant 0 : index
    %0 = vector.load %arg1[%c0, %c0_0] : memref<16x32xf32, #tpu.memory_space<vmem>>, vector<16x32xf32>
    %c0_1 = arith.constant 0 : index
    %c0_2 = arith.constant 0 : index
    %1 = vector.load %arg2[%c0_1, %c0_2] : memref<32x128xf32, #tpu.memory_space<vmem>>, vector<32x128xf32>
    %cst = arith.constant dense<0.000000e+00> : vector<16x128xf32>
    %2 = tpu.matmul %0, %1, %cst {dimension_numbers = #tpu.dot_dimension_numbers<[1], [0], [0], [1], [0, 0, 1, 1], [], []>} : vector<16x32xf32>, vector<32x128xf32>, vector<16x128xf32> -> vector<16x128xf32>
    %c0_3 = arith.constant 0 : index
    %c0_4 = arith.constant 0 : index
    %3 = vector.load %arg3[%c0_3, %c0_4] : memref<3x128xf32, #tpu.memory_space<vmem>>, vector<3x128xf32>
    %4 = vector.extract_strided_slice %3 {offsets = [0, 0], sizes = [1, 128], strides = [1, 1]} : vector<3x128xf32> to vector<1x128xf32>
    %5 = vector.extract_strided_slice %3 {offsets = [1, 0], sizes = [1, 128], strides = [1, 1]} : vector<3x128xf32> to vector<1x128xf32>
    %6 = vector.extract_strided_slice %3 {offsets = [2, 0], sizes = [1, 128], strides = [1, 1]} : vector<3x128xf32> to vector<1x128xf32>
    %7 = vector.broadcast %4 : vector<1x128xf32> to vector<16x128xf32>
    %8 = arith.addf %2, %7 : vector<16x128xf32>
    %cst_5 = arith.constant dense<0.000000e+00> : vector<16xf32>
    %9 = vector.multi_reduction <add>, %8, %cst_5 [1] : vector<16x128xf32> to vector<16xf32>
    %10 = vector.shape_cast %9 : vector<16xf32> to vector<16x1xf32>
    %cst_6 = arith.constant 1.562500e-02 : f32
    %11 = vector.broadcast %cst_6 : f32 to vector<16x1xf32>
    %12 = arith.mulf %10, %11 : vector<16x1xf32>
    %13 = vector.broadcast %12 : vector<16x1xf32> to vector<16x128xf32>
    %14 = arith.subf %8, %13 : vector<16x128xf32>
    %15 = arith.mulf %14, %14 : vector<16x128xf32>
    %cst_7 = arith.constant dense<0.000000e+00> : vector<16xf32>
    %16 = vector.multi_reduction <add>, %15, %cst_7 [1] : vector<16x128xf32> to vector<16xf32>
    %17 = vector.shape_cast %16 : vector<16xf32> to vector<16x1xf32>
    %18 = arith.mulf %12, %12 : vector<16x1xf32>
    %cst_8 = arith.constant 6.400000e+01 : f32
    %19 = vector.broadcast %cst_8 : f32 to vector<16x1xf32>
    %20 = arith.mulf %19, %18 : vector<16x1xf32>
    %21 = arith.subf %17, %20 : vector<16x1xf32>
    %cst_9 = arith.constant 1.562500e-02 : f32
    %22 = vector.broadcast %cst_9 : f32 to vector<16x1xf32>
    %23 = arith.mulf %21, %22 : vector<16x1xf32>
    %cst_10 = arith.constant 9.99999974E-6 : f32
    %24 = vector.broadcast %cst_10 : f32 to vector<16x1xf32>
    %25 = arith.addf %23, %24 : vector<16x1xf32>
    %26 = math.rsqrt %25 : vector<16x1xf32>
    %27 = vector.broadcast %26 : vector<16x1xf32> to vector<16x128xf32>
    %28 = arith.mulf %14, %27 : vector<16x128xf32>
    %29 = vector.broadcast %5 : vector<1x128xf32> to vector<16x128xf32>
    %30 = arith.mulf %28, %29 : vector<16x128xf32>
    %31 = vector.broadcast %6 : vector<1x128xf32> to vector<16x128xf32>
    %32 = arith.addf %30, %31 : vector<16x128xf32>
    %c0_11 = arith.constant 0 : index
    %c0_12 = arith.constant 0 : index
    %33 = vector.load %arg4[%c0_11, %c0_12] : memref<16x128xf32, #tpu.memory_space<vmem>>, vector<16x128xf32>
    tpu.vector_store %arg4[%c0_11, %c0_12], %32 {strides = array<i32>} : memref<16x128xf32, #tpu.memory_space<vmem>>, vector<16x128xf32>,
    return
  }
  func.func @transform_0(%arg0: i32) -> (i32, i32) {
    %c0_i32 = arith.constant 0 : i32
    %c0_i32_0 = arith.constant 0 : i32
    return %arg0, %c0_i32 : i32, i32
  }
  func.func @transform_1(%arg0: i32) -> (i32, i32) {
    %c0_i32 = arith.constant 0 : i32
    %c0_i32_0 = arith.constant 0 : i32
    %c0_i32_1 = arith.constant 0 : i32
    return %c0_i32, %c0_i32_0 : i32, i32
  }
  func.func @transform_2(%arg0: i32) -> (i32, i32) {
    %c0_i32 = arith.constant 0 : i32
    %c0_i32_0 = arith.constant 0 : i32
    %c0_i32_1 = arith.constant 0 : i32
    return %c0_i32, %c0_i32_0 : i32, i32
  }
  func.func @transform_3(%arg0: i32) -> (i32, i32) {
    %c0_i32 = arith.constant 0 : i32
    %c0_i32_0 = arith.constant 0 : i32
    return %arg0, %c0_i32 : i32, i32
  }
}

</mosaic_0001>

<bundles_post_ra>
// kernel: tpu_custom_call.1
= control target key start
LH: loop header
LB: loop body
LE: loop exit
PB: predicated region body
PF: predicated region fallthrough
CT: control target
= control target key end

     0   :  { %8 = vsyncpa [#allocation3], 0  ;;  %s371_s0 = inlined_call_operand.hbm [shape: f32[16,32], index: 0, kind: input, shape index: {}]   ;;  %s372_s1 = inlined_call_operand.hbm [shape: f32[32,128], index: 1, kind: input, shape index: {}]   ;;  %s373_s2 = inlined_call_operand.hbm [shape: f32[3,128], index: 2, kind: input, shape index: {}]   ;;  %s374_s3 = inlined_call_operand.hbm [shape: f32[16,128], index: 3, kind: output, shape index: {}]  }
   0x1   :  { %9 = vsyncpa [#allocation6], 0 }
   0x2   :  { %10 = vsyncpa [#allocation4], 0  ;;  %s322_s12 = smov [#allocation5]   ;;  %s323_s14 = smov [#allocation2]  }
   0x3   :  { %s28_s13 = sshll.u32 %s322_s12, 4  ;;  %s16_s15 = sshll.u32 %s323_s14, 4  ;;  %s29_s13 = int_to_ptr.vmem [resolvable:$true] %s28_s13  ;;  %s17_s15 = int_to_ptr.vmem [resolvable:$true] %s16_s15 }
   0x4   :  { %s244_s16 = scalar_lea.vmem %s29_s13, 512  ;;  %p249_p1 = scmp.lt.s32.totalorder %s29_s13, %s29_s13 }
   0x5   :  { %p245_p0 = scmp.ne.s32.totalorder %s29_s13, %s244_s16  ;;  %p250_p2 = scmp.lt.s32.totalorder %s244_s16, %s244_s16 }
   0x7   :  { %p251_p3 = por %p250_p2, %p249_p1 }
   0x9   :  { %p252_p4 = pnand %p251_p3, %p245_p0 }
   0xb   :  { %255 = shalt.err (!%p252_p4)
}
   0xc   :  { %s324_s17 = smov 128   ;;  %s325_s18 = smov 8  }
   0xd   :  { %34 = dma.hbm_to_vmem [thread:$0]  %s372_s1, 512, %s29_s13, [#allocation6], %s324_s17, %s324_s17, %s325_s18  }
   0xe   :  { %s264_s21 = scalar_lea.vmem %s17_s15, 256  ;;  %p269_p6 = scmp.lt.s32.totalorder %s17_s15, %s17_s15 }
   0xf   :  { %p265_p5 = scmp.ne.s32.totalorder %s17_s15, %s264_s21  ;;  %p270_p7 = scmp.lt.s32.totalorder %s264_s21, %s264_s21 }
  0x11   :  { %p271_p8 = por %p270_p7, %p269_p6 }
  0x13   :  { %p272_p9 = pnand %p271_p8, %p265_p5 }
  0x15   :  { %275 = shalt.err (!%p272_p9)
}
  0x16   :  { %22 = dma.hbm_to_vmem [thread:$0]  %s371_s0, 256, %s17_s15, [#allocation3], %s324_s17, %s324_s17, %s325_s18  }
  0x17   :  { %s326_s24 = smov [#allocation7]  }
  0x18   :  { %s41_s25 = sshll.u32 %s326_s24, 4  ;;  %s42_s25 = int_to_ptr.vmem [resolvable:$true] %s41_s25 }
  0x19   :  { %s284_s26 = scalar_lea.vmem %s42_s25, 64  ;;  %p289_p11 = scmp.lt.s32.totalorder %s42_s25, %s42_s25 }
  0x1a   :  { %p285_p10 = scmp.ne.s32.totalorder %s42_s25, %s284_s26  ;;  %p290_p12 = scmp.lt.s32.totalorder %s284_s26, %s284_s26 }
  0x1c   :  { %p291_p13 = por %p290_p12, %p289_p11 }
  0x1e   :  { %p292_p0 = pnand %p291_p13, %p285_p10 }
  0x20   :  { %295 = shalt.err (!%p292_p0)
}
  0x21   :  { %44 = dma.hbm_to_vmem [thread:$0]  %s373_s2, 64, %s42_s25, [#allocation6]  }
  0x22   :  { %316 = dma.done.wait [#allocation3], 256  }
  0x23   :  { %317 = vsyncadd [#allocation3], 4294967040 }
  0x24   :  { %318 = dma.done.wait [#allocation6], 576  }
  0x25   :  { %319 = vsyncadd [#allocation6], 4294966720  ;;  %vm65_vm0 = vcmask 261120   ;;  %v59_v0 = vld [vmem:[#allocation5 + $0x18] sm:$0xff]  ;;  %v58_v1 = vld [vmem:[#allocation5 + $0x10] sm:$0xff]  ;;  %v61_v6 = vlaneseq  ;;  %s327_s0 = smov [#allocation8]  }
  0x26   :  { %215 = vmatprep.subr.mxu0 %v59_v0  ;;  %v54_v2 = vld [vmem:[#allocation2] sm:$0xff]  ;;  %v57_v3 = vld [vmem:[#allocation5 + $0x8] sm:$0xff]  ;;  %v56_v4 = vld [vmem:[#allocation5] sm:$0xff]  ;;  %s194_s2 = sshll.u32 %s327_s0, 4  ;;  %s195_s2 = int_to_ptr.vmem [resolvable:$true] %s194_s2 }
  0x27   :  { %216 = vmatpush3.msra.mxu0 %v59_v0  ;;  %223 = vmatprep.mubr.msk.f32.mxu0 %vm65_vm0, %v54_v2  ;;  %v55_v5 = vld [vmem:[#allocation2 + $0x8] sm:$0xff]  ;;  %v62_v7 = vshrl.u32 %v61_v6, 7  ;;  %v60_v9 = vld [vmem:[#allocation7] sm:$0x7]  ;;  %s296_s28 = scalar_lea.vmem %s195_s2, 256  ;;  %p301_p2 = scmp.lt.s32.totalorder %s195_s2, %s195_s2 }
  0x28   :  { %217 = vmatprep.subr.mxu0 %v58_v1  ;;  %p297_p1 = scmp.ne.s32.totalorder %s195_s2, %s296_s28  ;;  %p302_p3 = scmp.lt.s32.totalorder %s296_s28, %s296_s28 }
  0x29   :  { %218 = vmatpush3.msra.mxu0 %v58_v1  ;;  %v63_v8 = vsub.s32 0, %v62_v7  ;;  %v177_v35 = vsub.s32 1, %v62_v7  ;;  %v183_v36 = vsub.s32 2, %v62_v7 }
  0x2a   :  { %219 = vmatprep.subr.mxu0 %v57_v3  ;;  %p303_p4 = por %p302_p3, %p301_p2 }
  0x2b   :  { %220 = vmatpush3.msra.mxu0 %v57_v3  ;;  %v64_v11 = vrot.slane %v60_v9, %v63_v8  ;;  %v178_v37 = vrot.slane %v60_v9, %v177_v35  ;;  %v184_v39 = vrot.slane %v60_v9, %v183_v36 }
  0x2c   :  { %221 = vmatprep.subr.mxu0 %v56_v4  ;;  %p304_p5 = pnand %p303_p4, %p297_p1 }
  0x2d   :  { %222 = vmatpush3.msra.mxu0 %v56_v4 }
  0x2e   :  { %224 = vmatmul.mubr.msk.f32.vlgmr.msra.gmra.mxu0 %vm65_vm0, %v55_v5 }
  0xee   :  { %v225_v10 = vpop.f32.mrf.mxu0 }
  0xef   :  { %v144_v14 = vadd.f32 %v225_v10, %v64_v11 }
  0xf0   :  { %v138_v12 = vpop.f32.mrf.mxu0 }
  0xf1   :  { %v139_v13 = vadd.f32 %v138_v12, %v64_v11 }
  0xf3   :  { %147 = vadd.xlane.f32.xlu0 %v139_v13 }
  0xf7   :  { %149 = vadd.xlane.f32.xlu0 %v144_v14 }
 0x17c   :  { %v148_v15 = vpop.xlane.xlu0 %147 }
 0x17d   :  { %v151_v16 = vmul.f32 0.015625, %v148_v15 }
 0x17f   :  { %v153_v17 = vsub.f32 %v139_v13, %v151_v16  ;;  %v161_v23 = vmul.f32 %v151_v16, %v151_v16 }
 0x180   :  { %v150_v18 = vpop.xlane.xlu0 %149 }
 0x181   :  { %v152_v19 = vmul.f32 0.015625, %v150_v18  ;;  %v155_v20 = vmul.f32 %v153_v17, %v153_v17  ;;  %v163_v25 = vmul.f32 64.0, %v161_v23 }
 0x183   :  { %v154_v21 = vsub.f32 %v144_v14, %v152_v19  ;;  %157 = vadd.xlane.f32.xlu1 %v155_v20  ;;  %v162_v24 = vmul.f32 %v152_v19, %v152_v19 }
 0x185   :  { %v156_v22 = vmul.f32 %v154_v21, %v154_v21  ;;  %v164_v28 = vmul.f32 64.0, %v162_v24 }
 0x187   :  { %159 = vadd.xlane.f32.xlu1 %v156_v22 }
 0x20c   :  { %v158_v26 = vpop.xlane.xlu1 %157 }
 0x20d   :  { %v165_v27 = vsub.f32 %v158_v26, %v163_v25 }
 0x20f   :  { %v167_v29 = vmul.f32 0.015625, %v165_v27 }
 0x210   :  { %v160_v30 = vpop.xlane.xlu1 %159 }
 0x211   :  { %v169_v31 = vadd.f32 1e-05, %v167_v29  ;;  %v166_v32 = vsub.f32 %v160_v30, %v164_v28 }
 0x213   :  { %232 = vrsqrt.f32 %v169_v31  ;;  %v168_v33 = vmul.f32 0.015625, %v166_v32 }
 0x215   :  { %v170_v34 = vadd.f32 1e-05, %v168_v33 }
 0x217   :  { %234 = vrsqrt.f32 %v170_v34 }
 0x220   :  { %v233_v38 = vpop.eup %232 }
 0x221   :  { %v173_v40 = vmul.f32 %v233_v38, %v153_v17 }
 0x223   :  { %v179_v41 = vmul.f32 %v178_v37, %v173_v40 }
 0x224   :  { %v235_v42 = vpop.eup %234 }
 0x225   :  { %v174_v43 = vmul.f32 %v235_v42, %v154_v21  ;;  %v185_v44 = vadd.f32 %v184_v39, %v179_v41 }
 0x227   :  { %v180_v45 = vmul.f32 %v178_v37, %v174_v43  ;;  %187 = vst [vmem:[#allocation8] sm:$0xff] %v185_v44 }
 0x229   :  { %v186_v46 = vadd.f32 %v184_v39, %v180_v45 }
 0x22b   :  { %188 = vst [vmem:[#allocation8 + $0x8] sm:$0xff] %v186_v46 }
 0x22c   :  { %307 = shalt.err (!%p304_p5)
}
 0x22d   :  { %200 = dma.vmem_to_hbm [thread:$0]  %s195_s2, 256, %s374_s3, [#allocation4], %s324_s17, %s324_s17, %s325_s18  }
 0x22e   :  { %320 = dma.done.wait [#allocation4], 256  }
 0x22f   :  { %321 = vsyncadd [#allocation4], 4294967040 }
 0x230   :  { %204 = vsyncpa [#allocation3], 1 }
 0x231   :  { %205 = vsyncpa [#allocation6], 1 }
 0x232   :  { %206 = vsyncpa [#allocation4], 1 }

</bundles_post_ra>
